<compile_context>
chip_gen: v7x
topology: tpu7x:2x2x1
jax: 0.10.0
libtpu: 0.0.40
codegen_flags: <defaults>
</compile_context>

<pallas_src>
import functools

import jax
import jax.numpy as jnp
from jax.experimental import pallas as pl
from jax.experimental.pallas import tpu as pltpu

N_IN, N_HID, N_OUT = 2, 10, 1
LANES = 128   # vreg lane width
SUB = 8       # vreg sublane count (f32)


def _round_up(a, b):
    return ((a + b - 1) // b) * b


def fused_affine_kernel(coef_ref, x_ref, out_ref):
    """One batch tile of the fused 3-layer Linear chain.

    coef_ref: (3,)            f32 in SMEM  -> [C0, C1, c]
    x_ref:    (2, tb, 128)    f32 in VMEM  (features, batch-sublanes, batch-lanes)
    out_ref:  (1, tb, 128)    f32 in VMEM

    Whole-slab VPU broadcast FMAs; no MXU, no inner loop, lane-dense output.
    """
    c0 = coef_ref[0]
    c1 = coef_ref[1]
    cb = coef_ref[2]
    out_ref[0, :, :] = c0 * x_ref[0, :, :] + c1 * x_ref[1, :, :] + cb


def prepare_params(params):
    """Collapse the activation-free Linear chain into one affine map (done once).

    y = x @ C.T + c   with   C = w3 @ w2 @ w1 (1, 2)
                             c = w3 @ (w2 @ b1 + b2) + b3 (1,)
    Returns a (3,) f32 coefficient vector [C0, C1, c] for SMEM residency.
    """
    hp = jax.lax.Precision.HIGHEST
    w1 = jnp.asarray(params["w1"], jnp.float32)   # (10, 2)
    b1 = jnp.asarray(params["b1"], jnp.float32)   # (10,)
    w2 = jnp.asarray(params["w2"], jnp.float32)   # (10, 10)
    b2 = jnp.asarray(params["b2"], jnp.float32)   # (10,)
    w3 = jnp.asarray(params["w3"], jnp.float32)   # (1, 10)
    b3 = jnp.asarray(params["b3"], jnp.float32)   # (1,)

    C = jnp.dot(w3, jnp.dot(w2, w1, precision=hp), precision=hp)          # (1, 2)
    c = jnp.dot(w3, jnp.dot(w2, b1, precision=hp) + b2, precision=hp) + b3  # (1,)
    return jnp.concatenate([C.reshape(-1), c.reshape(-1)]).astype(jnp.float32)


@functools.partial(jax.jit, static_argnames=("block_rows", "core_parallel"))
def model_circle_forward_lane_major(x3, coef, *, block_rows=2048,
                                    core_parallel=False):
    """Core entry point: x3 is already batch-on-lanes, (2, nb, 128) f32 with
    nb a multiple of 8. Returns (1, nb, 128) f32. No wrapper-side layout passes."""
    _, nb, lanes = x3.shape
    assert lanes == LANES and nb % SUB == 0, (nb, lanes)

    tb = max(SUB, min(_round_up(block_rows, SUB), nb))
    grid = (pl.cdiv(nb, tb),)   # last block may be ragged; writes past nb are masked

    dims = (pltpu.CORE_PARALLEL,) if core_parallel else ("parallel",)

    return pl.pallas_call(
        fused_affine_kernel,
        out_shape=jax.ShapeDtypeStruct((N_OUT, nb, LANES), jnp.float32),
        grid=grid,
        in_specs=[
            pl.BlockSpec(memory_space=pltpu.MemorySpace.SMEM),        # coef (3,)
            pl.BlockSpec((N_IN, tb, LANES), lambda i: (0, i, 0)),     # x tile
        ],
        out_specs=pl.BlockSpec((N_OUT, tb, LANES), lambda i: (0, i, 0)),
        compiler_params=pltpu.CompilerParams(dimension_semantics=dims),
    )(coef, x3)


@functools.partial(jax.jit, static_argnames=("block_rows", "core_parallel"))
def model_circle_forward(x, coef, *, block_rows=2048, core_parallel=False):
    """PyTorch-convention entry point: x (N, 2) f32 -> (N, 1) f32.

    Pays one layout pass ((N,2) -> (2, nb, 128), pad only to a multiple of
    8*128 samples). Production callers that can produce the lane-major layout
    upstream should call model_circle_forward_lane_major directly.
    """
    n = x.shape[0]
    n_pad = _round_up(max(n, 1), SUB * LANES)   # pad to a full (8,128) group only
    nb = n_pad // LANES

    xt = jnp.zeros((N_IN, n_pad), jnp.float32).at[:, :n].set(x.T)
    x3 = xt.reshape(N_IN, nb, LANES)

    out = model_circle_forward_lane_major(
        x3, coef, block_rows=block_rows, core_parallel=core_parallel)
    return out.reshape(n_pad)[:n].reshape(n, 1)


def model_circle_ref(x, params):
    """Layer-by-layer reference (validates the algebraic fusion)."""
    hp = jax.lax.Precision.HIGHEST
    h1 = jnp.dot(x, params["w1"].T, precision=hp) + params["b1"]
    h2 = jnp.dot(h1, params["w2"].T, precision=hp) + params["b2"]
    return jnp.dot(h2, params["w3"].T, precision=hp) + params["b3"]


def init_params(key):
    """Deterministic init mirroring the PyTorch layer shapes (out, in)."""
    k1, k2, k3, k4, k5, k6 = jax.random.split(key, 6)
    scale = 0.1
    return {
        "w1": scale * jax.random.normal(k1, (10, 2), jnp.float32),
        "b1": scale * jax.random.normal(k2, (10,), jnp.float32),
        "w2": scale * jax.random.normal(k3, (10, 10), jnp.float32),
        "b2": scale * jax.random.normal(k4, (10,), jnp.float32),
        "w3": scale * jax.random.normal(k5, (1, 10), jnp.float32),
        "b3": scale * jax.random.normal(k6, (1,), jnp.float32),
    }


if __name__ == "__main__":
    key = jax.random.PRNGKey(0)
    pkey, xkey = jax.random.split(key)
    params = init_params(pkey)
    coef = prepare_params(params)   # fused affine coefficients, staged once

    # (N, block_rows) cases: padding (N % 128 != 0), multi-step grid, and a
    # ragged last block (nb not a multiple of tb).
    for n, br in ((1000, 2048), (4096, 16), (3000, 16), (5000, 8)):
        x = jax.random.normal(jax.random.fold_in(xkey, n), (n, 2), jnp.float32)
        out = jax.block_until_ready(model_circle_forward(x, coef, block_rows=br))
        ref = model_circle_ref(x, params)
        assert out.shape == (n, 1)
        assert jnp.allclose(out, ref, atol=1e-5, rtol=1e-5), (
            n, float(jnp.abs(out - ref).max()))

    # Lane-major path: no wrapper-side transpose/pad at all.
    n = 2048
    x = jax.random.normal(jax.random.fold_in(xkey, 7), (n, 2), jnp.float32)
    x3 = x.T.reshape(N_IN, n // LANES, LANES)
    out3 = jax.block_until_ready(
        model_circle_forward_lane_major(x3, coef, block_rows=8))
    ref = model_circle_ref(x, params)
    assert jnp.allclose(out3.reshape(n, 1), ref, atol=1e-5, rtol=1e-5), (
        float(jnp.abs(out3.reshape(n, 1) - ref).max()))

    print("KERNEL_OK")
</pallas_src>

<mosaic_0001>
module attributes {stable_mosaic.version = 11 : i64} {
  func.func @fused_affine_kernel(%arg0: i32, %arg1: memref<3xf32, #tpu.memory_space<smem>>, %arg2: memref<2x8x128xf32, #tpu.memory_space<vmem>>, %arg3: memref<1x8x128xf32, #tpu.memory_space<vmem>>) attributes {dimension_semantics = [#tpu.dimension_semantics<parallel>], iteration_bounds = array<i64: 1>, scalar_prefetch = 0 : i64, scratch_operands = 0 : i64, tpu.core_type = #tpu.core_type<tc>, window_params = [{transform_indices = @transform_0, window_bounds = array<i64: 3>}, {transform_indices = @transform_1, window_bounds = array<i64: 2, 8, 128>}, {transform_indices = @transform_2, window_bounds = array<i64: 1, 8, 128>}]} {
    %c0 = arith.constant 0 : index
    %0 = memref.load %arg1[%c0] : memref<3xf32, #tpu.memory_space<smem>>
    %c1 = arith.constant 1 : index
    %1 = memref.load %arg1[%c1] : memref<3xf32, #tpu.memory_space<smem>>
    %c2 = arith.constant 2 : index
    %2 = memref.load %arg1[%c2] : memref<3xf32, #tpu.memory_space<smem>>
    %c0_0 = arith.constant 0 : index
    %c0_1 = arith.constant 0 : index
    %c0_2 = arith.constant 0 : index
    %3 = vector.load %arg2[%c0_0, %c0_1, %c0_2] : memref<2x8x128xf32, #tpu.memory_space<vmem>>, vector<1x8x128xf32>
    %4 = vector.shape_cast %3 : vector<1x8x128xf32> to vector<8x128xf32>
    %5 = vector.broadcast %0 : f32 to vector<8x128xf32>
    %6 = arith.mulf %5, %4 : vector<8x128xf32>
    %c1_3 = arith.constant 1 : index
    %c0_4 = arith.constant 0 : index
    %c0_5 = arith.constant 0 : index
    %7 = vector.load %arg2[%c1_3, %c0_4, %c0_5] : memref<2x8x128xf32, #tpu.memory_space<vmem>>, vector<1x8x128xf32>
    %8 = vector.shape_cast %7 : vector<1x8x128xf32> to vector<8x128xf32>
    %9 = vector.broadcast %1 : f32 to vector<8x128xf32>
    %10 = arith.mulf %9, %8 : vector<8x128xf32>
    %11 = arith.addf %6, %10 : vector<8x128xf32>
    %12 = vector.broadcast %2 : f32 to vector<8x128xf32>
    %13 = arith.addf %11, %12 : vector<8x128xf32>
    %c0_6 = arith.constant 0 : index
    %c0_7 = arith.constant 0 : index
    %c0_8 = arith.constant 0 : index
    %14 = vector.load %arg3[%c0_6, %c0_7, %c0_8] : memref<1x8x128xf32, #tpu.memory_space<vmem>>, vector<1x8x128xf32>
    %15 = vector.shape_cast %14 : vector<1x8x128xf32> to vector<8x128xf32>
    %16 = vector.shape_cast %13 : vector<8x128xf32> to vector<1x8x128xf32>
    tpu.vector_store %arg3[%c0_6, %c0_7, %c0_8], %16 {strides = array<i32>} : memref<1x8x128xf32, #tpu.memory_space<vmem>>, vector<1x8x128xf32>,
    return
  }
  func.func @transform_0(%arg0: i32) -> i32 {
    %c0_i32 = arith.constant 0 : i32
    %c0_i32_0 = arith.constant 0 : i32
    return %c0_i32 : i32
  }
  func.func @transform_1(%arg0: i32) -> (i32, i32, i32) {
    %c0_i32 = arith.constant 0 : i32
    %c0_i32_0 = arith.constant 0 : i32
    %c0_i32_1 = arith.constant 0 : i32
    return %c0_i32, %arg0, %c0_i32_0 : i32, i32, i32
  }
  func.func @transform_2(%arg0: i32) -> (i32, i32, i32) {
    %c0_i32 = arith.constant 0 : i32
    %c0_i32_0 = arith.constant 0 : i32
    %c0_i32_1 = arith.constant 0 : i32
    return %c0_i32, %arg0, %c0_i32_0 : i32, i32, i32
  }
}

</mosaic_0001>

<bundles_post_ra>
// kernel: model_circle_forward_lane_major.1
= control target key start
LH: loop header
LB: loop body
LE: loop exit
PB: predicated region body
PF: predicated region fallthrough
CT: control target
= control target key end

     0   :  { %7 = vsyncpa [#allocation5], 0  ;;  %s185_s0 = inlined_call_operand.vmem [shape: f32[3], index: 0, kind: input, shape index: {}]   ;;  %s186_s1 = inlined_call_operand.hbm [shape: f32[2,8,128], index: 1, kind: input, shape index: {}]   ;;  %s187_s2 = inlined_call_operand.hbm [shape: f32[1,8,128], index: 2, kind: output, shape index: {}]  }
   0x1   :  { %8 = vsyncpa [#allocation3], 0 }
   0x2   :  { %9 = vsyncpa [#allocation4], 0  ;;  %s16_s11 = sshll.u32 %s185_s0, 4  ;;  %s17_s11 = int_to_ptr.vmem [resolvable:$true] %s16_s11 }
   0x3   :  { %s76_s12 = scalar_lea.vmem %s17_s11, 16  ;;  %p81_p1 = scmp.lt.s32.totalorder %s17_s11, %s17_s11 }
   0x4   :  { %p77_p0 = scmp.ne.s32.totalorder %s17_s11, %s76_s12  ;;  %p82_p2 = scmp.lt.s32.totalorder %s76_s12, %s76_s12 }
   0x6   :  { %p83_p3 = por %p82_p2, %p81_p1 }
   0x8   :  { %p84_p4 = pnand %p83_p3, %p77_p0 }
   0xa   :  { %87 = shalt.err (!%p84_p4)
}
   0xb   :  { %s138_s13 = smov [#allocation2]   ;;  %s139_s14 = smov [#allocation6]  }
   0xc   :  { %19 = dma.vmem_to_smem %s17_s11, 16, %s138_s13, [#allocation5]  }
   0xd   :  { %s25_s15 = sshll.u32 %s139_s14, 4  ;;  %s88_s18 = scalar_lea.hbm %s186_s1, 256  ;;  %s26_s15 = int_to_ptr.vmem [resolvable:$true] %s25_s15 }
   0xe   :  { %p89_p5 = scmp.ne.s32.totalorder %s186_s1, %s88_s18  ;;  %p92_p6 = scmp.lt.u32.totalorder %s88_s18, %s186_s1 }
  0x10   :  { %p94_p7 = pnand %p92_p6, %p89_p5 }
  0x12   :  { %97 = shalt.err (!%p94_p7)
}
  0x13   :  { %s98_s22 = scalar_lea.vmem %s26_s15, 256  ;;  %p103_p9 = scmp.lt.s32.totalorder %s26_s15, %s26_s15 }
  0x14   :  { %p99_p8 = scmp.ne.s32.totalorder %s26_s15, %s98_s22  ;;  %p104_p10 = scmp.lt.s32.totalorder %s98_s22, %s98_s22 }
  0x16   :  { %p105_p11 = por %p104_p10, %p103_p9 }
  0x18   :  { %p106_p12 = pnand %p105_p11, %p99_p8 }
  0x1a   :  { %109 = shalt.err (!%p106_p12)
}
  0x1b   :  { %s140_s23 = smov 128   ;;  %s141_s24 = smov 8  }
  0x1c   :  { %31 = dma.hbm_to_vmem [thread:$0]  %s186_s1, 256, %s26_s15, [#allocation3], %s140_s23, %s140_s23, %s141_s24  }
  0x1d   :  { %132 = dma.done.wait [#allocation5], 16  }
  0x1e   :  { %133 = vsyncadd [#allocation5], 4294967280 }
  0x1f   :  { %134 = dma.done.wait [#allocation3], 256  }
  0x20   :  { %135 = vsyncadd [#allocation3], 4294967040 }
  0x21   :  { %38 = sfence }
  0x22   :  { %s39_s27 = sld [smem:[#allocation2]]  ;;  %s69_s28 = sld [smem:[#allocation2 + $0x1]]  ;;  %v42_v0 = vld [vmem:[#allocation6] sm:$0xff]  ;;  %v46_v1 = vld [vmem:[#allocation6 + $0x8] sm:$0xff] }
  0x23   :  { %s70_s29 = sld [smem:[#allocation2 + $0x2]]  ;;  %s142_s30 = smov [#allocation7]  }
  0x24   :  { %s59_s3 = sshll.u32 %s142_s30, 4  ;;  %s60_s3 = int_to_ptr.vmem [resolvable:$true] %s59_s3 }
  0x25   :  { %s110_s1 = scalar_lea.vmem %s60_s3, 128  ;;  %p115_p0 = scmp.lt.s32.totalorder %s60_s3, %s60_s3 }
  0x26   :  { %p111_p13 = scmp.ne.s32.totalorder %s60_s3, %s110_s1  ;;  %p116_p1 = scmp.lt.s32.totalorder %s110_s1, %s110_s1 }
  0x28   :  { %v43_v2 = vstv %s39_s27  ;;  %v47_v3 = vstv %s69_s28  ;;  %p117_p2 = por %p116_p1, %p115_p0 }
  0x29   :  { %v44_v4 = vmul.f32 %v43_v2, %v42_v0  ;;  %v48_v5 = vmul.f32 %v47_v3, %v46_v1  ;;  %v50_v6 = vstv %s70_s29 }
  0x2a   :  { %p118_p3 = pnand %p117_p2, %p111_p13 }
  0x2b   :  { %v49_v7 = vadd.f32 %v48_v5, %v44_v4 }
  0x2d   :  { %v51_v8 = vadd.f32 %v50_v6, %v49_v7 }
  0x2f   :  { %52 = vst [vmem:[#allocation7] sm:$0xff] %v51_v8 }
  0x30   :  { %121 = shalt.err (!%p118_p3)
}
  0x31   :  { %s122_s6 = scalar_lea.hbm %s187_s2, 128 }
  0x32   :  { %p123_p4 = scmp.ne.s32.totalorder %s187_s2, %s122_s6  ;;  %p126_p5 = scmp.lt.u32.totalorder %s122_s6, %s187_s2 }
  0x34   :  { %p128_p6 = pnand %p126_p5, %p123_p4 }
  0x36   :  { %131 = shalt.err (!%p128_p6)
}
  0x37   :  { %62 = dma.vmem_to_hbm [thread:$0]  %s60_s3, 128, %s187_s2, [#allocation4]  }
  0x38   :  { %136 = dma.done.wait [#allocation4], 128  }
  0x39   :  { %137 = vsyncadd [#allocation4], 4294967168 }
  0x3a   :  { %66 = vsyncpa [#allocation3], 1 }
  0x3b   :  { %67 = vsyncpa [#allocation4], 1 }
  0x3c   :  { %68 = vsyncpa [#allocation5], 1 }

</bundles_post_ra>
